<compile_context>
chip_gen: v7x
topology: tpu7x:2x2x1
jax: 0.10.0
libtpu: 0.0.40
codegen_flags: <defaults>
</compile_context>

<pallas_src>
import functools
import math

import jax
import jax.numpy as jnp
from jax import lax
from jax.experimental import pallas as pl
from jax.experimental.pallas import tpu as pltpu


SUB = 256  # inner lane sub-slice (2 lane-chunks); bounds the per-iteration vreg working set.


def condition_mlp_kernel(gp_ref, xin_ref,                                    # blocked per-point data
                         wgb_ref, wcd_ref, wq_ref, wcr_ref, wdr_ref,         # small resident weights
                         bact_ref,                                           # SMEM scalar
                         out_ref,
                         *, hidden, sub, n_sub, neg_slope, act_scale, eps):
    # Resident weights: loaded once per grid step, loop-invariant.
    wgb = wgb_ref[...]      # (2H, C+4)  block-diag [Wmod_s | bmod ; W1_newp | b1]
    wcd = wcd_ref[...]      # (4, H)     (wd * A)^T            -> acc_dot linear-in-g coeffs
    wq = wq_ref[...]        # (10, H)    sym pair weights of A -> acc_sq quadratic-in-g coeffs
    wcr = wcr_ref[...]      # (4, H)     2 * A^T               -> acc_sq linear-in-g coeffs
    wdr = wdr_ref[...]      # (1, H)     demodulated output weight wd
    bact = bact_ref[0]      # FusedLeakyReLU bias

    def body(j, carry):
        s = pl.multiple_of(j * sub, sub)
        gp0 = gp_ref[0, :, pl.ds(s, sub)]            # (K, S)  group_p x
        gp1 = gp_ref[1, :, pl.ds(s, sub)]            # (K, S)  group_p y
        gp2 = gp_ref[2, :, pl.ds(s, sub)]            # (K, S)  group_p z
        xin = xin_ref[:, pl.ds(s, sub)]              # (C+4, S) [feat; new_p xyz; ones]

        x2 = gp0 * gp0
        y2 = gp1 * gp1
        z2 = gp2 * gp2
        dsq = x2 + y2 + z2
        dist = jnp.sqrt(dsq)                         # ||group_p||  (EUP)

        # gamma = Wmod_s @ feat + bmod ; b = W1_newp @ new_p + b1   -- one MXU call.
        gb = jnp.dot(wgb, xin, preferred_element_type=jnp.float32)          # (2H, S)
        gamma = gb[:hidden]
        b = gb[hidden:]

        u = gamma * b            # modulated, k-independent part of linear1
        g2 = gamma * gamma
        g2b = gamma * u
        u2 = u * u

        # All H-contractions on the MXU (per-point coefficient rows).
        cd = jnp.dot(wcd, gamma, preferred_element_type=jnp.float32)        # (4, S)
        cq = jnp.dot(wq, g2, preferred_element_type=jnp.float32)            # (10, S)
        cr = jnp.dot(wcr, g2b, preferred_element_type=jnp.float32)          # (4, S)
        d0 = jnp.dot(wdr, u, preferred_element_type=jnp.float32)            # (1, S)
        s1 = jnp.sum(u2, axis=0, keepdims=True)                             # (1, S)

        # Per-neighbour combination on the VPU: K on sublanes, points on lanes.
        # acc_dot_k = sum_h wd_h * v_{h,k},  acc_sq_k = sum_h v_{h,k}^2, with
        # v_{h,k} = gamma_h * (A_h . [dist, gp]) + gamma_h * b_h.
        acc_dot = (cd[0:1] * dist + cd[1:2] * gp0 + cd[2:3] * gp1 + cd[3:4] * gp2 + d0)
        acc_sq = (cq[0:1] * dsq
                  + cq[1:2] * (dist * gp0) + cq[2:3] * (dist * gp1) + cq[3:4] * (dist * gp2)
                  + cq[4:5] * x2 + cq[5:6] * (gp0 * gp1) + cq[6:7] * (gp0 * gp2)
                  + cq[7:8] * y2 + cq[8:9] * (gp1 * gp2) + cq[9:10] * z2
                  + cr[0:1] * dist + cr[1:2] * gp0 + cr[2:3] * gp1 + cr[3:4] * gp2
                  + s1)

        # input demodulation + F.linear(out_channel=1) + FusedLeakyReLU(0.2) * sqrt(2)
        z = acc_dot * lax.rsqrt(acc_sq + eps) + bact
        out_ref[:, pl.ds(s, sub)] = z * jnp.where(z >= 0.0, act_scale, neg_slope * act_scale)
        return carry

    lax.fori_loop(0, n_sub, body, 0)


def _choose_tiling(bn, tbn):
    """Pick (sub-slices per grid tile, padded B*N). Guarantees >=2 grid steps when possible."""
    n_sub = -(-bn // SUB)
    max_spt = max(1, tbn // SUB)
    if n_sub <= 1:
        spt = 1
    else:
        spt = min(max_spt, max(1, n_sub // 2))      # keep >=2 grid steps (v7x has 2 TCs)
    n_sub_pad = -(-n_sub // spt) * spt
    return spt, n_sub_pad * SUB


@functools.partial(jax.jit, static_argnames=("tbn",))
def condition_mlp(group_p, new_p, feature, params, *, tbn=2048):
    """group_p: (B,3,N,K), new_p: (B,N,3), feature: (B,C,N) -> (B,N,K)."""
    B, _, N, K = group_p.shape
    _, C, _ = feature.shape
    H = params["w1"].shape[0]
    BN = B * N
    f32 = jnp.float32

    # ---- layout plumbing: points (B*N) on lanes, K on sublanes ----
    gp_t = jnp.transpose(group_p, (1, 3, 0, 2)).reshape(3, K, BN).astype(f32)
    np_t = jnp.transpose(new_p, (2, 0, 1)).reshape(3, BN).astype(f32)
    feat_t = jnp.transpose(feature, (1, 0, 2)).reshape(C, BN).astype(f32)
    # single MXU input [feature; new_p xyz; ones] -- the ones row carries both biases.
    x_in = jnp.concatenate([feat_t, np_t, jnp.ones((1, BN), f32)], axis=0)   # (C+4, BN)

    # ---- lane tiling: outer grid tile TBN = spt*SUB, inner fori_loop over SUB-lane slices ----
    spt, BN_pad = _choose_tiling(BN, tbn)
    TBN = spt * SUB
    if BN_pad != BN:
        p = BN_pad - BN
        gp_t = jnp.pad(gp_t, ((0, 0), (0, 0), (0, p)))
        x_in = jnp.pad(x_in, ((0, 0), (0, p)))

    # ---- hoisted, data-independent parameter prep ----
    w1 = params["w1"].astype(f32)                     # (H,7): [dist, new_p xyz, group_p xyz]
    b1 = params["b1"].astype(f32)
    A = jnp.concatenate([w1[:, 0:1], w1[:, 4:7]], axis=1)       # (H,4): coeffs of [dist, gp xyz]
    w1np = w1[:, 1:4]                                           # (H,3): coeffs of new_p xyz
    wmod_s = params["wmod"].astype(f32) * (1.0 / math.sqrt(C))  # EqualLinear 1/sqrt(C) scale
    bmod = params["bmod"].astype(f32).reshape(H, 1)
    wgb = jnp.concatenate([
        jnp.concatenate([wmod_s, jnp.zeros((H, 3), f32), bmod], axis=1),
        jnp.concatenate([jnp.zeros((H, C), f32), w1np, b1[:, None]], axis=1)],
        axis=0)                                                  # (2H, C+4), block-diagonal

    # ModulationLinear weight: 1/sqrt(H) scale + demodulation (out_channel == 1).
    w2s = params["w2"].astype(f32).reshape(H) * (1.0 / math.sqrt(H))
    wd = w2s * lax.rsqrt(jnp.sum(w2s * w2s) + 1e-8)              # (H,)

    wcd = (A * wd[:, None]).T                                    # (4, H)
    pairs = [(0, 0), (0, 1), (0, 2), (0, 3), (1, 1), (1, 2), (1, 3), (2, 2), (2, 3), (3, 3)]
    wq = jnp.stack([(1.0 if i == j else 2.0) * A[:, i] * A[:, j] for i, j in pairs], axis=0)  # (10,H)
    wcr = 2.0 * A.T                                              # (4, H)
    wdr = wd.reshape(1, H)                                       # (1, H)
    bact = params["bact"].astype(f32).reshape(1)

    kernel = functools.partial(
        condition_mlp_kernel, hidden=H, sub=SUB, n_sub=spt,
        neg_slope=0.2, act_scale=math.sqrt(2.0), eps=1e-8)

    out = pl.pallas_call(
        kernel,
        out_shape=jax.ShapeDtypeStruct((K, BN_pad), jnp.float32),
        grid_spec=pltpu.PrefetchScalarGridSpec(
            num_scalar_prefetch=0,
            grid=(BN_pad // TBN,),
            in_specs=[
                pl.BlockSpec((3, K, TBN), lambda i: (0, 0, i)),       # group_p (xyz, K, points)
                pl.BlockSpec((C + 4, TBN), lambda i: (0, i)),         # [feat; new_p; ones]
                pl.BlockSpec((2 * H, C + 4), lambda i: (0, 0)),       # fused gamma / b weight
                pl.BlockSpec((4, H), lambda i: (0, 0)),               # wcd
                pl.BlockSpec((10, H), lambda i: (0, 0)),              # wq
                pl.BlockSpec((4, H), lambda i: (0, 0)),               # wcr
                pl.BlockSpec((1, H), lambda i: (0, 0)),               # wd row
                pl.BlockSpec(memory_space=pltpu.MemorySpace.SMEM),    # FusedLeakyReLU bias
            ],
            out_specs=pl.BlockSpec((K, TBN), lambda i: (0, i)),       # lane-dense output slab
        ),
        compiler_params=pltpu.CompilerParams(
            dimension_semantics=("parallel",),
            vmem_limit_bytes=32 * 1024 * 1024,
        ),
    )(gp_t, x_in, wgb, wcd, wq, wcr, wdr, bact)

    out = out[:, :BN].reshape(K, B, N)
    return jnp.transpose(out, (1, 2, 0))


def reference_condition_mlp(group_p, new_p, feature, params):
    """Pure-JAX mirror of the PyTorch forward, for verification."""
    B, _, N, K = group_p.shape
    _, C, _ = feature.shape
    eps = 1e-8

    gp = jnp.transpose(group_p, (0, 2, 3, 1)).reshape(B * N, K, 3)
    feat = jnp.transpose(feature, (0, 2, 1)).reshape(B * N, C)
    npr = jnp.broadcast_to(new_p[:, :, None, :], (B, N, K, 3)).reshape(B * N, K, 3)

    dist = jnp.linalg.norm(gp, axis=-1, keepdims=True)
    relation = jnp.concatenate([dist, npr, gp], axis=-1)                 # (BN, K, 7)
    x = relation @ params["w1"].T + params["b1"]                         # (BN, K, H)

    gamma = feat @ (params["wmod"] * (1.0 / math.sqrt(C))).T + params["bmod"]   # (BN, H)
    H = params["w1"].shape[0]
    x = (x * gamma[:, None, :]).reshape(B * N * K, H)

    w2 = params["w2"] * (1.0 / math.sqrt(H))                             # (1, H)
    w2 = w2 * lax.rsqrt(jnp.sum(w2 ** 2, axis=1, keepdims=True) + eps)
    x = x * lax.rsqrt(jnp.sum(x ** 2, axis=1, keepdims=True) + eps)
    out = x @ w2.T                                                       # (BN*K, 1)
    out = out + params["bact"].reshape(1, 1)
    out = jnp.where(out >= 0, out, 0.2 * out) * math.sqrt(2.0)
    return out.reshape(B, N, K)


if __name__ == "__main__":
    def make_inputs(key, B, N, K, C, H):
        k_gp, k_np, k_ft, k_w1, k_b1, k_wm, k_w2 = jax.random.split(key, 7)
        group_p = jax.random.normal(k_gp, (B, 3, N, K), jnp.float32)
        new_p = jax.random.normal(k_np, (B, N, 3), jnp.float32)
        feature = jax.random.normal(k_ft, (B, C, N), jnp.float32)
        params = {
            "w1": jax.random.normal(k_w1, (H, 7), jnp.float32) * 0.1,    # nn.Linear(7, H).weight
            "b1": jax.random.normal(k_b1, (H,), jnp.float32) * 0.1,      # nn.Linear(7, H).bias
            "wmod": jax.random.normal(k_wm, (H, C), jnp.float32),        # EqualLinear weight
            "bmod": jnp.ones((H,), jnp.float32),                         # EqualLinear bias_init=1
            "w2": jax.random.normal(k_w2, (1, H), jnp.float32),          # ModulationLinear weight
            "bact": jnp.zeros((1,), jnp.float32),                        # FusedLeakyReLU bias
        }
        return group_p, new_p, feature, params

    key = jax.random.PRNGKey(0)
    k1, k2, k3 = jax.random.split(key, 3)
    K, C, H = 8, 16, 32

    # small single-tile case (B*N = 32 points)
    B, N = 2, 16
    gp, np_in, feat, params = make_inputs(k1, B, N, K, C, H)
    out = jax.block_until_ready(condition_mlp(gp, np_in, feat, params, tbn=2048))
    assert out.shape == (B, N, K)
    ref = reference_condition_mlp(gp, np_in, feat, params)
    assert jnp.allclose(out, ref, rtol=1e-3, atol=2e-4), "mismatch vs JAX reference (small)"

    # two-grid-step case exercising the padded / multi-tile path (B*N = 400 -> 2 tiles of 256)
    B2, N2 = 2, 200
    gp2, np2, feat2, params2 = make_inputs(k2, B2, N2, K, C, H)
    out2 = jax.block_until_ready(condition_mlp(gp2, np2, feat2, params2, tbn=256))
    ref2 = reference_condition_mlp(gp2, np2, feat2, params2)
    assert jnp.allclose(out2, ref2, rtol=1e-3, atol=2e-4), "mismatch vs JAX reference (2 tiles)"

    # larger case exercising the production path: 2048-lane tiles, 8-deep inner loop, grid >= 2
    B3, N3 = 2, 2500
    gp3, np3, feat3, params3 = make_inputs(k3, B3, N3, K, C, H)
    out3 = jax.block_until_ready(condition_mlp(gp3, np3, feat3, params3, tbn=2048))
    ref3 = reference_condition_mlp(gp3, np3, feat3, params3)
    assert jnp.allclose(out3, ref3, rtol=1e-3, atol=2e-4), "mismatch vs JAX reference (large)"

    print("KERNEL_OK")
</pallas_src>

<mosaic_0001>
module attributes {stable_mosaic.version = 11 : i64} {
  func.func @condition_mlp_kernel(%arg0: i32, %arg1: memref<3x8x256xf32, #tpu.memory_space<vmem>>, %arg2: memref<20x256xf32, #tpu.memory_space<vmem>>, %arg3: memref<64x20xf32, #tpu.memory_space<vmem>>, %arg4: memref<4x32xf32, #tpu.memory_space<vmem>>, %arg5: memref<10x32xf32, #tpu.memory_space<vmem>>, %arg6: memref<4x32xf32, #tpu.memory_space<vmem>>, %arg7: memref<1x32xf32, #tpu.memory_space<vmem>>, %arg8: memref<1xf32, #tpu.memory_space<smem>>, %arg9: memref<8x256xf32, #tpu.memory_space<vmem>>) attributes {dimension_semantics = [#tpu.dimension_semantics<parallel>], iteration_bounds = array<i64: 1>, scalar_prefetch = 0 : i64, scratch_operands = 0 : i64, tpu.core_type = #tpu.core_type<tc>, window_params = [{transform_indices = @transform_0, window_bounds = array<i64: 3, 8, 256>}, {transform_indices = @transform_1, window_bounds = array<i64: 20, 256>}, {pipeline_mode = #tpu.pipeline_mode<synchronous>, transform_indices = @transform_2, window_bounds = array<i64: 64, 20>}, {pipeline_mode = #tpu.pipeline_mode<synchronous>, transform_indices = @transform_3, window_bounds = array<i64: 4, 32>}, {pipeline_mode = #tpu.pipeline_mode<synchronous>, transform_indices = @transform_4, window_bounds = array<i64: 10, 32>}, {pipeline_mode = #tpu.pipeline_mode<synchronous>, transform_indices = @transform_5, window_bounds = array<i64: 4, 32>}, {pipeline_mode = #tpu.pipeline_mode<synchronous>, transform_indices = @transform_6, window_bounds = array<i64: 1, 32>}, {transform_indices = @transform_7, window_bounds = array<i64: 1>}, {transform_indices = @transform_8, window_bounds = array<i64: 8, 256>}]} {
    %c0 = arith.constant 0 : index
    %c0_0 = arith.constant 0 : index
    %0 = vector.load %arg3[%c0, %c0_0] : memref<64x20xf32, #tpu.memory_space<vmem>>, vector<64x20xf32>
    %c0_1 = arith.constant 0 : index
    %c0_2 = arith.constant 0 : index
    %1 = vector.load %arg4[%c0_1, %c0_2] : memref<4x32xf32, #tpu.memory_space<vmem>>, vector<4x32xf32>
    %c0_3 = arith.constant 0 : index
    %c0_4 = arith.constant 0 : index
    %2 = vector.load %arg5[%c0_3, %c0_4] : memref<10x32xf32, #tpu.memory_space<vmem>>, vector<10x32xf32>
    %c0_5 = arith.constant 0 : index
    %c0_6 = arith.constant 0 : index
    %3 = vector.load %arg6[%c0_5, %c0_6] : memref<4x32xf32, #tpu.memory_space<vmem>>, vector<4x32xf32>
    %c0_7 = arith.constant 0 : index
    %c0_8 = arith.constant 0 : index
    %4 = vector.load %arg7[%c0_7, %c0_8] : memref<1x32xf32, #tpu.memory_space<vmem>>, vector<1x32xf32>
    %c0_9 = arith.constant 0 : index
    %5 = memref.load %arg8[%c0_9] : memref<1xf32, #tpu.memory_space<smem>>
    %c0_i32 = arith.constant 0 : i32
    %c256_i32 = arith.constant 256 : i32
    %6 = arith.muli %c0_i32, %c256_i32 : i32
    %7 = tpu.assume_multiple %6, 256 : i32
    %c0_10 = arith.constant 0 : index
    %c0_11 = arith.constant 0 : index
    %8 = arith.index_cast %7 : i32 to index
    %9 = vector.load %arg1[%c0_10, %c0_11, %8] : memref<3x8x256xf32, #tpu.memory_space<vmem>>, vector<1x8x256xf32>
    %10 = vector.shape_cast %9 : vector<1x8x256xf32> to vector<8x256xf32>
    %c1 = arith.constant 1 : index
    %c0_12 = arith.constant 0 : index
    %11 = arith.index_cast %7 : i32 to index
    %12 = vector.load %arg1[%c1, %c0_12, %11] : memref<3x8x256xf32, #tpu.memory_space<vmem>>, vector<1x8x256xf32>
    %13 = vector.shape_cast %12 : vector<1x8x256xf32> to vector<8x256xf32>
    %c2 = arith.constant 2 : index
    %c0_13 = arith.constant 0 : index
    %14 = arith.index_cast %7 : i32 to index
    %15 = vector.load %arg1[%c2, %c0_13, %14] : memref<3x8x256xf32, #tpu.memory_space<vmem>>, vector<1x8x256xf32>
    %16 = vector.shape_cast %15 : vector<1x8x256xf32> to vector<8x256xf32>
    %c0_14 = arith.constant 0 : index
    %17 = arith.index_cast %7 : i32 to index
    %18 = vector.load %arg2[%c0_14, %17] : memref<20x256xf32, #tpu.memory_space<vmem>>, vector<20x256xf32>
    %19 = arith.mulf %10, %10 : vector<8x256xf32>
    %20 = arith.mulf %13, %13 : vector<8x256xf32>
    %21 = arith.mulf %16, %16 : vector<8x256xf32>
    %22 = arith.addf %19, %20 : vector<8x256xf32>
    %23 = arith.addf %22, %21 : vector<8x256xf32>
    %24 = math.sqrt %23 : vector<8x256xf32>
    %cst = arith.constant dense<0.000000e+00> : vector<64x256xf32>
    %25 = tpu.matmul %0, %18, %cst {dimension_numbers = #tpu.dot_dimension_numbers<[1], [0], [0], [1], [0, 0, 1, 1], [], []>} : vector<64x20xf32>, vector<20x256xf32>, vector<64x256xf32> -> vector<64x256xf32>
    %26 = vector.extract_strided_slice %25 {offsets = [0, 0], sizes = [32, 256], strides = [1, 1]} : vector<64x256xf32> to vector<32x256xf32>
    %27 = vector.extract_strided_slice %25 {offsets = [32, 0], sizes = [32, 256], strides = [1, 1]} : vector<64x256xf32> to vector<32x256xf32>
    %28 = arith.mulf %26, %27 : vector<32x256xf32>
    %29 = arith.mulf %26, %26 : vector<32x256xf32>
    %30 = arith.mulf %26, %28 : vector<32x256xf32>
    %31 = arith.mulf %28, %28 : vector<32x256xf32>
    %cst_15 = arith.constant dense<0.000000e+00> : vector<4x256xf32>
    %32 = tpu.matmul %1, %26, %cst_15 {dimension_numbers = #tpu.dot_dimension_numbers<[1], [0], [0], [1], [0, 0, 1, 1], [], []>} : vector<4x32xf32>, vector<32x256xf32>, vector<4x256xf32> -> vector<4x256xf32>
    %cst_16 = arith.constant dense<0.000000e+00> : vector<10x256xf32>
    %33 = tpu.matmul %2, %29, %cst_16 {dimension_numbers = #tpu.dot_dimension_numbers<[1], [0], [0], [1], [0, 0, 1, 1], [], []>} : vector<10x32xf32>, vector<32x256xf32>, vector<10x256xf32> -> vector<10x256xf32>
    %cst_17 = arith.constant dense<0.000000e+00> : vector<4x256xf32>
    %34 = tpu.matmul %3, %30, %cst_17 {dimension_numbers = #tpu.dot_dimension_numbers<[1], [0], [0], [1], [0, 0, 1, 1], [], []>} : vector<4x32xf32>, vector<32x256xf32>, vector<4x256xf32> -> vector<4x256xf32>
    %cst_18 = arith.constant dense<0.000000e+00> : vector<1x256xf32>
    %35 = tpu.matmul %4, %28, %cst_18 {dimension_numbers = #tpu.dot_dimension_numbers<[1], [0], [0], [1], [0, 0, 1, 1], [], []>} : vector<1x32xf32>, vector<32x256xf32>, vector<1x256xf32> -> vector<1x256xf32>
    %cst_19 = arith.constant dense<0.000000e+00> : vector<256xf32>
    %36 = vector.multi_reduction <add>, %31, %cst_19 [0] : vector<32x256xf32> to vector<256xf32>
    %37 = vector.shape_cast %36 : vector<256xf32> to vector<1x256xf32>
    %38 = vector.extract_strided_slice %32 {offsets = [0, 0], sizes = [1, 256], strides = [1, 1]} : vector<4x256xf32> to vector<1x256xf32>
    %39 = vector.broadcast %38 : vector<1x256xf32> to vector<8x256xf32>
    %40 = arith.mulf %39, %24 : vector<8x256xf32>
    %41 = vector.extract_strided_slice %32 {offsets = [1, 0], sizes = [1, 256], strides = [1, 1]} : vector<4x256xf32> to vector<1x256xf32>
    %42 = vector.broadcast %41 : vector<1x256xf32> to vector<8x256xf32>
    %43 = arith.mulf %42, %10 : vector<8x256xf32>
    %44 = arith.addf %40, %43 : vector<8x256xf32>
    %45 = vector.extract_strided_slice %32 {offsets = [2, 0], sizes = [1, 256], strides = [1, 1]} : vector<4x256xf32> to vector<1x256xf32>
    %46 = vector.broadcast %45 : vector<1x256xf32> to vector<8x256xf32>
    %47 = arith.mulf %46, %13 : vector<8x256xf32>
    %48 = arith.addf %44, %47 : vector<8x256xf32>
    %49 = vector.extract_strided_slice %32 {offsets = [3, 0], sizes = [1, 256], strides = [1, 1]} : vector<4x256xf32> to vector<1x256xf32>
    %50 = vector.broadcast %49 : vector<1x256xf32> to vector<8x256xf32>
    %51 = arith.mulf %50, %16 : vector<8x256xf32>
    %52 = arith.addf %48, %51 : vector<8x256xf32>
    %53 = vector.broadcast %35 : vector<1x256xf32> to vector<8x256xf32>
    %54 = arith.addf %52, %53 : vector<8x256xf32>
    %55 = vector.extract_strided_slice %33 {offsets = [0, 0], sizes = [1, 256], strides = [1, 1]} : vector<10x256xf32> to vector<1x256xf32>
    %56 = vector.broadcast %55 : vector<1x256xf32> to vector<8x256xf32>
    %57 = arith.mulf %56, %23 : vector<8x256xf32>
    %58 = vector.extract_strided_slice %33 {offsets = [1, 0], sizes = [1, 256], strides = [1, 1]} : vector<10x256xf32> to vector<1x256xf32>
    %59 = arith.mulf %24, %10 : vector<8x256xf32>
    %60 = vector.broadcast %58 : vector<1x256xf32> to vector<8x256xf32>
    %61 = arith.mulf %60, %59 : vector<8x256xf32>
    %62 = arith.addf %57, %61 : vector<8x256xf32>
    %63 = vector.extract_strided_slice %33 {offsets = [2, 0], sizes = [1, 256], strides = [1, 1]} : vector<10x256xf32> to vector<1x256xf32>
    %64 = arith.mulf %24, %13 : vector<8x256xf32>
    %65 = vector.broadcast %63 : vector<1x256xf32> to vector<8x256xf32>
    %66 = arith.mulf %65, %64 : vector<8x256xf32>
    %67 = arith.addf %62, %66 : vector<8x256xf32>
    %68 = vector.extract_strided_slice %33 {offsets = [3, 0], sizes = [1, 256], strides = [1, 1]} : vector<10x256xf32> to vector<1x256xf32>
    %69 = arith.mulf %24, %16 : vector<8x256xf32>
    %70 = vector.broadcast %68 : vector<1x256xf32> to vector<8x256xf32>
    %71 = arith.mulf %70, %69 : vector<8x256xf32>
    %72 = arith.addf %67, %71 : vector<8x256xf32>
    %73 = vector.extract_strided_slice %33 {offsets = [4, 0], sizes = [1, 256], strides = [1, 1]} : vector<10x256xf32> to vector<1x256xf32>
    %74 = vector.broadcast %73 : vector<1x256xf32> to vector<8x256xf32>
    %75 = arith.mulf %74, %19 : vector<8x256xf32>
    %76 = arith.addf %72, %75 : vector<8x256xf32>
    %77 = vector.extract_strided_slice %33 {offsets = [5, 0], sizes = [1, 256], strides = [1, 1]} : vector<10x256xf32> to vector<1x256xf32>
    %78 = arith.mulf %10, %13 : vector<8x256xf32>
    %79 = vector.broadcast %77 : vector<1x256xf32> to vector<8x256xf32>
    %80 = arith.mulf %79, %78 : vector<8x256xf32>
    %81 = arith.addf %76, %80 : vector<8x256xf32>
    %82 = vector.extract_strided_slice %33 {offsets = [6, 0], sizes = [1, 256], strides = [1, 1]} : vector<10x256xf32> to vector<1x256xf32>
    %83 = arith.mulf %10, %16 : vector<8x256xf32>
    %84 = vector.broadcast %82 : vector<1x256xf32> to vector<8x256xf32>
    %85 = arith.mulf %84, %83 : vector<8x256xf32>
    %86 = arith.addf %81, %85 : vector<8x256xf32>
    %87 = vector.extract_strided_slice %33 {offsets = [7, 0], sizes = [1, 256], strides = [1, 1]} : vector<10x256xf32> to vector<1x256xf32>
    %88 = vector.broadcast %87 : vector<1x256xf32> to vector<8x256xf32>
    %89 = arith.mulf %88, %20 : vector<8x256xf32>
    %90 = arith.addf %86, %89 : vector<8x256xf32>
    %91 = vector.extract_strided_slice %33 {offsets = [8, 0], sizes = [1, 256], strides = [1, 1]} : vector<10x256xf32> to vector<1x256xf32>
    %92 = arith.mulf %13, %16 : vector<8x256xf32>
    %93 = vector.broadcast %91 : vector<1x256xf32> to vector<8x256xf32>
    %94 = arith.mulf %93, %92 : vector<8x256xf32>
    %95 = arith.addf %90, %94 : vector<8x256xf32>
    %96 = vector.extract_strided_slice %33 {offsets = [9, 0], sizes = [1, 256], strides = [1, 1]} : vector<10x256xf32> to vector<1x256xf32>
    %97 = vector.broadcast %96 : vector<1x256xf32> to vector<8x256xf32>
    %98 = arith.mulf %97, %21 : vector<8x256xf32>
    %99 = arith.addf %95, %98 : vector<8x256xf32>
    %100 = vector.extract_strided_slice %34 {offsets = [0, 0], sizes = [1, 256], strides = [1, 1]} : vector<4x256xf32> to vector<1x256xf32>
    %101 = vector.broadcast %100 : vector<1x256xf32> to vector<8x256xf32>
    %102 = arith.mulf %101, %24 : vector<8x256xf32>
    %103 = arith.addf %99, %102 : vector<8x256xf32>
    %104 = vector.extract_strided_slice %34 {offsets = [1, 0], sizes = [1, 256], strides = [1, 1]} : vector<4x256xf32> to vector<1x256xf32>
    %105 = vector.broadcast %104 : vector<1x256xf32> to vector<8x256xf32>
    %106 = arith.mulf %105, %10 : vector<8x256xf32>
    %107 = arith.addf %103, %106 : vector<8x256xf32>
    %108 = vector.extract_strided_slice %34 {offsets = [2, 0], sizes = [1, 256], strides = [1, 1]} : vector<4x256xf32> to vector<1x256xf32>
    %109 = vector.broadcast %108 : vector<1x256xf32> to vector<8x256xf32>
    %110 = arith.mulf %109, %13 : vector<8x256xf32>
    %111 = arith.addf %107, %110 : vector<8x256xf32>
    %112 = vector.extract_strided_slice %34 {offsets = [3, 0], sizes = [1, 256], strides = [1, 1]} : vector<4x256xf32> to vector<1x256xf32>
    %113 = vector.broadcast %112 : vector<1x256xf32> to vector<8x256xf32>
    %114 = arith.mulf %113, %16 : vector<8x256xf32>
    %115 = arith.addf %111, %114 : vector<8x256xf32>
    %116 = vector.broadcast %37 : vector<1x256xf32> to vector<8x256xf32>
    %117 = arith.addf %115, %116 : vector<8x256xf32>
    %cst_20 = arith.constant 9.99999993E-9 : f32
    %118 = vector.broadcast %cst_20 : f32 to vector<8x256xf32>
    %119 = arith.addf %117, %118 : vector<8x256xf32>
    %120 = math.rsqrt %119 : vector<8x256xf32>
    %121 = arith.mulf %54, %120 : vector<8x256xf32>
    %122 = vector.broadcast %5 : f32 to vector<8x256xf32>
    %123 = arith.addf %121, %122 : vector<8x256xf32>
    %cst_21 = arith.constant 0.000000e+00 : f32
    %124 = vector.broadcast %cst_21 : f32 to vector<8x256xf32>
    %125 = arith.cmpf oge, %123, %124 : vector<8x256xf32>
    %cst_22 = arith.constant 1.41421354 : f32
    %cst_23 = arith.constant 0.282842726 : f32
    %126 = vector.broadcast %cst_22 : f32 to vector<8x256xf32>
    %127 = vector.broadcast %cst_23 : f32 to vector<8x256xf32>
    %128 = arith.select %125, %126, %127 : vector<8x256xi1>, vector<8x256xf32>
    %129 = arith.mulf %123, %128 : vector<8x256xf32>
    %c0_24 = arith.constant 0 : index
    %130 = arith.index_cast %7 : i32 to index
    %131 = vector.load %arg9[%c0_24, %130] : memref<8x256xf32, #tpu.memory_space<vmem>>, vector<8x256xf32>
    tpu.vector_store %arg9[%c0_24, %130], %129 {strides = array<i32>} : memref<8x256xf32, #tpu.memory_space<vmem>>, vector<8x256xf32>,
    %c1_i32 = arith.constant 1 : i32
    return
  }
  func.func @transform_0(%arg0: i32) -> (i32, i32, i32) {
    %c0_i32 = arith.constant 0 : i32
    %c0_i32_0 = arith.constant 0 : i32
    %c0_i32_1 = arith.constant 0 : i32
    return %c0_i32, %c0_i32_0, %arg0 : i32, i32, i32
  }
  func.func @transform_1(%arg0: i32) -> (i32, i32) {
    %c0_i32 = arith.constant 0 : i32
    %c0_i32_0 = arith.constant 0 : i32
    return %c0_i32, %arg0 : i32, i32
  }
  func.func @transform_2(%arg0: i32) -> (i32, i32) {
    %c0_i32 = arith.constant 0 : i32
    %c0_i32_0 = arith.constant 0 : i32
    %c0_i32_1 = arith.constant 0 : i32
    return %c0_i32, %c0_i32_0 : i32, i32
  }
  func.func @transform_3(%arg0: i32) -> (i32, i32) {
    %c0_i32 = arith.constant 0 : i32
    %c0_i32_0 = arith.constant 0 : i32
    %c0_i32_1 = arith.constant 0 : i32
    return %c0_i32, %c0_i32_0 : i32, i32
  }
  func.func @transform_4(%arg0: i32) -> (i32, i32) {
    %c0_i32 = arith.constant 0 : i32
    %c0_i32_0 = arith.constant 0 : i32
    %c0_i32_1 = arith.constant 0 : i32
    return %c0_i32, %c0_i32_0 : i32, i32
  }
  func.func @transform_5(%arg0: i32) -> (i32, i32) {
    %c0_i32 = arith.constant 0 : i32
    %c0_i32_0 = arith.constant 0 : i32
    %c0_i32_1 = arith.constant 0 : i32
    return %c0_i32, %c0_i32_0 : i32, i32
  }
  func.func @transform_6(%arg0: i32) -> (i32, i32) {
    %c0_i32 = arith.constant 0 : i32
    %c0_i32_0 = arith.constant 0 : i32
    %c0_i32_1 = arith.constant 0 : i32
    return %c0_i32, %c0_i32_0 : i32, i32
  }
  func.func @transform_7(%arg0: i32) -> i32 {
    %c0_i32 = arith.constant 0 : i32
    %c0_i32_0 = arith.constant 0 : i32
    return %c0_i32 : i32
  }
  func.func @transform_8(%arg0: i32) -> (i32, i32) {
    %c0_i32 = arith.constant 0 : i32
    %c0_i32_0 = arith.constant 0 : i32
    return %c0_i32, %arg0 : i32, i32
  }
}

</mosaic_0001>

<bundles_post_ra>
// kernel: condition_mlp.1
= control target key start
LH: loop header
LB: loop body
LE: loop exit
PB: predicated region body
PF: predicated region fallthrough
CT: control target
= control target key end

     0   :  { %v911_v3 = vmov 0.0   ;;  %vm111_vm0 = vcmask 1043456   ;;  %vm86_vm1 = vcmask 162816   ;;  %vm263_vm2 = vcmask 261120   ;;  %s1284_s1 = inlined_call_operand.vmem [shape: f32[20,256], index: 1, kind: input, shape index: {}]   ;;  %s1285_s2 = inlined_call_operand.vmem [shape: f32[64,20], index: 2, kind: input, shape index: {}]   ;;  %s1286_s3 = inlined_call_operand.vmem [shape: f32[4,32], index: 3, kind: input, shape index: {}]   ;;  %s1287_s4 = inlined_call_operand.vmem [shape: f32[10,32], index: 4, kind: input, shape index: {}]   ;;  %s1288_s5 = inlined_call_operand.vmem [shape: f32[4,32], index: 5, kind: input, shape index: {}]   ;;  %s1289_s6 = inlined_call_operand.vmem [shape: f32[1,32], index: 6, kind: input, shape index: {}]   ;;  %s1290_s0 = inlined_call_operand.vmem [shape: f32[3,8,256], index: 0, kind: input, shape index: {}]   ;;  %s1291_s7 = inlined_call_operand.<no memory space> [shape: f32[1], index: 7, kind: input, shape index: {}]   ;;  %s1292_s8 = inlined_call_operand.vmem [shape: f32[8,256], index: 8, kind: output, shape index: {}]  }
   0x1   :  { %v57_v0 = vld [vmem:[%s1284_s1 + $0x8] sm:$0xff]  ;;  %v59_v1 = vld [vmem:[%s1284_s1 + $0x18] sm:$0xff]  ;;  %v56_v2 = vld [vmem:[%s1284_s1] sm:$0xff]  ;;  %182 = vmatprep.mubr.f32.mxu0 %v911_v3  ;;  %331 = vmatprep.mubr.f32.mxu1 %v911_v3 }
   0x2   :  { %v865_v4 = vpack.c.bf16 %v59_v1, %v57_v0  ;;  %v58_v5 = vld [vmem:[%s1284_s1 + $0x10] sm:$0xff]  ;;  %v61_v7 = vld [vmem:[%s1284_s1 + $0x28] sm:$0xf]  ;;  %v60_v8 = vld [vmem:[%s1284_s1 + $0x20] sm:$0xf] }
   0x3   :  { %v867_v6 = vpack.c.bf16 %v58_v5, %v56_v2  ;;  %v30_v9 = vld [vmem:[%s1285_s2] sm:$0xff]  ;;  %v31_v10 = vld [vmem:[%s1285_s2 + $0x8] sm:$0xff]  ;;  %v32_v11 = vld [vmem:[%s1285_s2 + $0x10] sm:$0xff] }
   0x4   :  { %866 = vmatprep.subr.bf16.mxu0 %v865_v4  ;;  %v33_v12 = vld [vmem:[%s1285_s2 + $0x18] sm:$0xff]  ;;  %v34_v13 = vld [vmem:[%s1285_s2 + $0x20] sm:$0xff]  ;;  %v35_v14 = vld [vmem:[%s1285_s2 + $0x28] sm:$0xff] }
   0x5   :  { %868 = vmatpush1.bf16.msra.mxu0 %v867_v6  ;;  %v36_v15 = vld [vmem:[%s1285_s2 + $0x30] sm:$0xff]  ;;  %v37_v16 = vld [vmem:[%s1285_s2 + $0x38] sm:$0xff]  ;;  %v38_v44 = vld [vmem:[%s1286_s3] sm:$0xf] }
   0x6   :  { %850 = vmatprep.subr.msk.mxu0 %vm111_vm0, %v61_v7  ;;  %v39_v1 = vld [vmem:[%s1287_s4] sm:$0xff] }
   0x9   :  { %851 = vmatpush1.msk.msra.mxu0 %vm111_vm0, %v60_v8 }
   0xa   :  { %852 = vmatmul.mubr.msk.f32.vlgmr.msra.gmra.mrb[0].mxu0 %vm86_vm1, %v30_v9 }
   0xb   :  { %188 = vmatprep.mubr.f32.mxu0 %v911_v3 }
   0xe   :  { %853 = vmatmul.mubr.msk.f32.gmra.mrb[2].mxu0 %vm86_vm1, %v31_v10 }
   0xf   :  { %194 = vmatprep.mubr.f32.mxu0 %v911_v3 }
  0x12   :  { %854 = vmatmul.mubr.msk.f32.gmra.mrb[4].mxu0 %vm86_vm1, %v32_v11 }
  0x13   :  { %200 = vmatprep.mubr.f32.mxu0 %v911_v3 }
  0x16   :  { %855 = vmatmul.mubr.msk.f32.gmra.mrb[6].mxu0 %vm86_vm1, %v33_v12 }
  0x17   :  { %206 = vmatprep.mubr.f32.mxu0 %v911_v3 }
  0x1a   :  { %856 = vmatmul.mubr.msk.f32.gmra.mrb[8].mxu0 %vm86_vm1, %v34_v13 }
  0x1b   :  { %212 = vmatprep.mubr.f32.mxu0 %v911_v3 }
  0x1e   :  { %857 = vmatmul.mubr.msk.f32.gmra.mrb[10].mxu0 %vm86_vm1, %v35_v14  ;;  %v40_v14 = vld [vmem:[%s1287_s4 + $0x8] sm:$0x3] }
  0x1f   :  { %218 = vmatprep.mubr.f32.mxu0 %v911_v3 }
  0x22   :  { %858 = vmatmul.mubr.msk.f32.gmra.mrb[12].mxu0 %vm86_vm1, %v36_v15 }
  0x23   :  { %224 = vmatprep.mubr.f32.mxu0 %v911_v3 }
  0x26   :  { %859 = vmatmul.mubr.msk.f32.gmra.mrb[14].mxu0 %vm86_vm1, %v37_v16 }
  0xdd   :  { %v184_v17 = vpop.f32.mrb[0].mxu0 }
  0xde   :  { %v186_v18 = vpop.f32.mrb[1].mxu0  ;;  %v239_v20 = vmul.f32 %v184_v17, %v184_v17 }
  0xdf   :  { %v240_v24 = vmul.f32 %v186_v18, %v186_v18 }
  0xe1   :  { %v190_v19 = vpop.f32.mrb[2].mxu0 }
  0xe2   :  { %v241_v21 = vmul.f32 %v190_v19, %v190_v19  ;;  %v192_v22 = vpop.f32.mrb[3].mxu0  ;;  %v871_v23 = vpack.c.bf16 %v190_v19, %v184_v17 }
  0xe3   :  { %v242_v25 = vmul.f32 %v192_v22, %v192_v22  ;;  %v869_v26 = vpack.c.bf16 %v192_v22, %v186_v18 }
  0xe4   :  { %v879_v27 = vpack.c.bf16 %v241_v21, %v239_v20 }
  0xe5   :  { %v196_v28 = vpop.f32.mrb[4].mxu0  ;;  %870 = vmatprep.subr.bf16.mxu1 %v869_v26  ;;  %v877_v29 = vpack.c.bf16 %v242_v25, %v240_v24 }
  0xe6   :  { %v198_v30 = vpop.f32.mrb[5].mxu0  ;;  %872 = vmatpush1.bf16.msra.mxu1 %v871_v23  ;;  %v243_v32 = vmul.f32 %v196_v28, %v196_v28 }
  0xe7   :  { %v244_v36 = vmul.f32 %v198_v30, %v198_v30 }
  0xe9   :  { %v1017_v31 = vpop.f32.mrb[6].mxu0 }
  0xea   :  { %v245_v33 = vmul.f32 %v1017_v31, %v1017_v31  ;;  %v1021_v34 = vpop.f32.mrb[7].mxu0  ;;  %v875_v35 = vpack.c.bf16 %v1017_v31, %v196_v28 }
  0xeb   :  { %v246_v37 = vmul.f32 %v1021_v34, %v1021_v34  ;;  %v873_v38 = vpack.c.bf16 %v1021_v34, %v198_v30 }
  0xec   :  { %v883_v39 = vpack.c.bf16 %v245_v33, %v243_v32 }
  0xed   :  { %v208_v40 = vpop.f32.mrb[8].mxu0  ;;  %874 = vmatprep.subr.bf16.mxu1 %v873_v38  ;;  %v881_v41 = vpack.c.bf16 %v246_v37, %v244_v36  ;;  %v1105_v37 = vld [vmem:[%s1290_s0 + $0x28] sm:$0xff] }
  0xee   :  { %v1027_v42 = vmul.f32 %v208_v40, %v184_v17  ;;  %v210_v43 = vpop.f32.mrb[9].mxu0  ;;  %876 = vmatpush1.bf16.msra.mxu1 %v875_v35  ;;  %v1115_v40 = vmul.f32 %v1105_v37, %v1105_v37 }
  0xef   :  { %v232_v45 = vmul.f32 %v210_v43, %v186_v18  ;;  %878 = vmatprep.subr.bf16.mxu1 %v877_v29  ;;  %v1064_v29 = vld [vmem:[%s1290_s0] sm:$0xff] }
  0xf0   :  { %v247_v46 = vmul.f32 %v1027_v42, %v184_v17  ;;  %v255_v52 = vmul.f32 %v1027_v42, %v1027_v42  ;;  %v1083_v32 = vmul.f32 %v1064_v29, %v1064_v29  ;;  %1300 = vst [vmem:[#allocation3_spill] sm:$0xff] %v1115_v40 }
  0xf1   :  { %v248_v47 = vmul.f32 %v232_v45, %v186_v18  ;;  %v214_v48 = vpop.f32.mrb[10].mxu0  ;;  %860 = vmatmul.mubr.msk.f32.vlgmr.msra.gmra.mrb[0].mxu1 %vm263_vm2, %v38_v44  ;;  %v256_v56 = vmul.f32 %v232_v45, %v232_v45 }
  0xf2   :  { %v233_v49 = vmul.f32 %v214_v48, %v190_v19  ;;  %v216_v50 = vpop.f32.mrb[11].mxu0  ;;  %880 = vmatpush1.bf16.msra.mxu1 %v879_v27  ;;  %408 = vmatprep.mubr.f32.mxu1 %v911_v3  ;;  %v41_v27 = vld [vmem:[%s1288_s5] sm:$0xf]  ;;  %v587_v48 = vlaneseq }
  0xf3   :  { %v234_v51 = vmul.f32 %v216_v50, %v192_v22  ;;  %882 = vmatprep.subr.bf16.mxu1 %v881_v41 }
  0xf4   :  { %v249_v53 = vmul.f32 %v233_v49, %v190_v19  ;;  %v257_v54 = vmul.f32 %v233_v49, %v233_v49  ;;  %v895_v55 = vpack.c.bf16 %v233_v49, %v1027_v42 }
  0xf5   :  { %v250_v57 = vmul.f32 %v234_v51, %v192_v22  ;;  %v258_v58 = vmul.f32 %v234_v51, %v234_v51  ;;  %v220_v59 = vpop.f32.mrb[12].mxu0  ;;  %v893_v60 = vpack.c.bf16 %v234_v51, %v232_v45 }
  0xf6   :  { %v887_v61 = vpack.c.bf16 %v249_v53, %v247_v46  ;;  %v569_v62 = vadd.f32 %v257_v54, %v255_v52  ;;  %v235_v63 = vmul.f32 %v220_v59, %v196_v28  ;;  %v222_v0 = vpop.f32.mrb[13].mxu0  ;;  %884 = vmatpush1.bf16.msra.mxu1 %v883_v39  ;;  %v1130_v53 = vshrl.u32 %v587_v48, 7 }
  0xf7   :  { %v578_v2 = vadd.f32 %v258_v58, %v256_v56  ;;  %v236_v4 = vmul.f32 %v222_v0, %v198_v30  ;;  %v885_v5 = vpack.c.bf16 %v250_v57, %v248_v47 }
  0xf8   :  { %v251_v6 = vmul.f32 %v235_v63, %v196_v28  ;;  %v259_v7 = vmul.f32 %v235_v63, %v235_v63  ;;  %v42_v28 = vld [vmem:[%s1289_s6] sm:$0x1]  ;;  %v1148_v0 = vsub.s32 2, %v1130_v53 }
  0xf9   :  { %v252_v8 = vmul.f32 %v236_v4, %v198_v30  ;;  %v260_v9 = vmul.f32 %v236_v4, %v236_v4  ;;  %v226_v10 = vpop.f32.mrb[14].mxu0  ;;  %861 = vmatmul.mubr.msk.f32.vlgmr.msra.gmra.mrb[2].mxu1 %vm263_vm2, %v39_v1  ;;  %886 = vmatprep.subr.bf16.mxu1 %v885_v5  ;;  %v1069_v30 = vld [vmem:[%s1290_s0 + $0x10] sm:$0xff]  ;;  %v1151_v1 = vsub.s32 3, %v1130_v53 }
  0xfa   :  { %v570_v11 = vadd.f32 %v569_v62, %v259_v7  ;;  %v237_v12 = vmul.f32 %v226_v10, %v1017_v31  ;;  %v228_v13 = vpop.f32.mrb[15].mxu0  ;;  %888 = vmatpush1.bf16.msra.mxu1 %v887_v61  ;;  %414 = vmatprep.mubr.f32.mxu1 %v911_v3  ;;  %v1087_v33 = vmul.f32 %v1069_v30, %v1069_v30  ;;  %v1142_v62 = vsub.s32 0, %v1130_v53 }
  0xfb   :  { %v579_v15 = vadd.f32 %v578_v2, %v260_v9  ;;  %v238_v16 = vmul.f32 %v228_v13, %v1021_v34  ;;  %1303 = vst [vmem:[#allocation6_spill] sm:$0xff] %v1148_v0  ;;  %v711_v9 = vsub.s32 5, %v1130_v53  ;;  %v707_v10 = vmul.f32 %v1069_v30, %v1064_v29 }
  0xfc   :  { %v253_v17 = vmul.f32 %v237_v12, %v1017_v31  ;;  %v261_v18 = vmul.f32 %v237_v12, %v237_v12  ;;  %v899_v19 = vpack.c.bf16 %v237_v12, %v235_v63  ;;  %v1079_v31 = vld [vmem:[%s1290_s0 + $0x18] sm:$0xff]  ;;  %v68_v39 = vadd.f32 %v1087_v33, %v1083_v32 }
  0xfd   :  { %v254_v20 = vmul.f32 %v238_v16, %v1021_v34  ;;  %v262_v21 = vmul.f32 %v238_v16, %v238_v16  ;;  %862 = vmatmul.mubr.msk.f32.gmra.mrb[4].mxu1 %vm263_vm2, %v40_v14  ;;  %v897_v22 = vpack.c.bf16 %v238_v16, %v236_v4  ;;  %v1092_v34 = vld [vmem:[%s1290_s0 + $0x20] sm:$0xff]  ;;  %v1100_v36 = vmul.f32 %v1079_v31, %v1079_v31 }
  0xfe   :  { %v891_v23 = vpack.c.bf16 %v253_v17, %v251_v6  ;;  %v571_v24 = vadd.f32 %v570_v11, %v261_v18  ;;  %488 = vmatprep.mubr.f32.mxu1 %v911_v3  ;;  %v1109_v38 = vmul.f32 %v1092_v34, %v1092_v34  ;;  %v1145_v63 = vsub.s32 1, %v1130_v53 }
  0xff   :  { %v580_v25 = vadd.f32 %v579_v15, %v262_v21  ;;  %v889_v26 = vpack.c.bf16 %v254_v20, %v252_v8  ;;  %v697_v4 = vsub.s32 4, %v1130_v53  ;;  %v1169_v11 = vmul.f32 %v1092_v34, %v1064_v29 }
 0x100   :  { %v70_v42 = vadd.f32 %v68_v39, %v1109_v38  ;;  %v572_v46 = vrot.slane %v571_v24, 4  ;;  %v725_v12 = vsub.s32 6, %v1130_v53  ;;  %v1187_v20 = vmul.f32 %v1092_v34, %v1069_v30 }
 0x101   :  { %890 = vmatprep.subr.bf16.mxu1 %v889_v26  ;;  %v581_v47 = vrot.slane %v580_v25, 4 }
 0x102   :  { %892 = vmatpush1.bf16.msra.mxu1 %v891_v23  ;;  %903 = vrsqrt.f32 %v70_v42  ;;  %v1125_v51 = vadd.f32 %v572_v46, %v571_v24  ;;  %vm74_vm3 = vcmp.eq.f32.partialorder %v70_v42, inf  ;;  %vm76_vm5 = vcmp.eq.f32.partialorder %v70_v42, 0.0 }
 0x103   :  { %894 = vmatprep.subr.bf16.mxu1 %v893_v60  ;;  %v1128_v52 = vadd.f32 %v581_v47, %v580_v25 }
 0x104   :  { %1301 = vst [vmem:[#allocation4_spill] sm:$0xff] %v1125_v51 }
 0x105   :  { %863 = vmatmul.mubr.msk.f32.vlgmr.msra.gmra.mrb[6].mxu1 %vm263_vm2, %v41_v27  ;;  %1302 = vst [vmem:[#allocation5_spill] sm:$0xff] %v1128_v52 }
 0x106   :  { %896 = vmatpush1.bf16.msra.mxu1 %v895_v55  ;;  %562 = vmatprep.mubr.f32.mxu1 %v911_v3  ;;  %v1074_v3 = vld [vmem:[%s1290_s0 + $0x8] sm:$0xff]  ;;  %v77_v55 = vand.u32 2147483648, %v70_v42 }
 0x107   :  { %898 = vmatprep.subr.bf16.mxu1 %v897_v22  ;;  %v1096_v35 = vmul.f32 %v1074_v3, %v1074_v3  ;;  %v1181_v17 = vmul.f32 %v1079_v31, %v1074_v3  ;;  %v1191_v21 = vmul.f32 %v1105_v37, %v1074_v3  ;;  %v1195_v22 = vmul.f32 %v1105_v37, %v1079_v31 }
 0x109   :  { %v69_v41 = vadd.f32 %v1100_v36, %v1096_v35 }
 0x10a   :  { %900 = vmatpush1.bf16.msra.mxu1 %v899_v19 }
 0x10b   :  { %v1121_v43 = vadd.f32 %v69_v41, %v1115_v40 }
 0x10c   :  { %v904_v44 = vpop.eup %903 }
 0x10d   :  { %864 = vmatmul.mubr.msk.f32.vlgmr.msra.gmra.mrb[8].mxu1 %vm263_vm2, %v42_v28  ;;  %905 = vrsqrt.f32 %v1121_v43  ;;  %v73_v49 = vmul.f32 %v904_v44, %v70_v42  ;;  %vm81_vm4 = vcmp.eq.f32.partialorder %v1121_v43, inf  ;;  %v84_v56 = vand.u32 2147483648, %v1121_v43 }
 0x10e   :  { %vm83_vm6 = vcmp.eq.f32.partialorder %v1121_v43, 0.0 }
 0x10f   :  { %v75_v58 = vsel %vm74_vm3, %v70_v42, %v73_v49 }
 0x110   :  { %v1153_v2 = vsel %vm76_vm5, %v77_v55, %v75_v58 }
 0x111   :  { %v653_v6 = vmul.f32 %v1153_v2, %v1064_v29  ;;  %v667_v7 = vmul.f32 %v1069_v30, %v1153_v2  ;;  %v681_v8 = vmul.f32 %v1092_v34, %v1153_v2 }
 0x117   :  { %v906_v45 = vpop.eup %905 }
 0x118   :  { %v80_v50 = vmul.f32 %v906_v45, %v1121_v43 }
 0x11a   :  { %v82_v59 = vsel %vm81_vm4, %v1121_v43, %v80_v50 }
 0x11b   :  { %v1156_v5 = vsel %vm83_vm6, %v84_v56, %v82_v59 }
 0x11c   :  { %v654_v14 = vmul.f32 %v1156_v5, %v1074_v3  ;;  %v668_v15 = vmul.f32 %v1079_v31, %v1156_v5  ;;  %v682_v16 = vmul.f32 %v1105_v37, %v1156_v5 }
 0x1c4   :  { %v1132_v54 = vpop.f32.mrb[0].mxu1 }
 0x1c5   :  { %v1135_v57 = vpop.f32.mrb[1].mxu1  ;;  %v590_v18 = vrot.slane %v1132_v54, %v1142_v62  ;;  %v600_v23 = vrot.slane %v1132_v54, %v1145_v63  ;;  %v612_v28 = vrot.slane %v1132_v54, %v1148_v0  ;;  %v624_v49 = vrot.slane %v1132_v54, %v1151_v1 }
 0x1c6   :  { %v604_v39 = vrot.slane %v1135_v57, %v1145_v63  ;;  %v594_v45 = vrot.slane %v1135_v57, %v1142_v62  ;;  %v616_v50 = vrot.slane %v1135_v57, %v1148_v0  ;;  %v628_v55 = vrot.slane %v1135_v57, %v1151_v1 }
 0x1c8   :  { %v606_v54 = vmul.f32 %v604_v39, %v1074_v3 }
 0x1cc   :  { %v410_v19 = vpop.f32.mrb[2].mxu1 }
 0x1cd   :  { %v646_v24 = vrot.slane %v410_v19, %v1142_v62  ;;  %v658_v25 = vrot.slane %v410_v19, %v1145_v63  ;;  %v672_v26 = vrot.slane %v410_v19, %v1148_v0  ;;  %v412_v27 = vpop.f32.mrb[3].mxu1  ;;  %v686_v48 = vrot.slane %v410_v19, %v1151_v1 }
 0x1ce   :  { %v650_v41 = vrot.slane %v412_v27, %v1142_v62  ;;  %v662_v44 = vrot.slane %v412_v27, %v1145_v63  ;;  %v676_v56 = vrot.slane %v412_v27, %v1148_v0  ;;  %v698_v60 = vrot.slane %v410_v19, %v697_v4 }
 0x1cf   :  { %v651_v46 = vmul.f32 %v646_v24, %v70_v42  ;;  %v663_v47 = vmul.f32 %v658_v25, %v653_v6  ;;  %v677_v61 = vmul.f32 %v672_v26, %v667_v7  ;;  %v605_v6 = vmul.f32 %v600_v23, %v1064_v29 }
 0x1d0   :  { %v416_v58 = vpop.f32.mrb[4].mxu1  ;;  %v652_v42 = vmul.f32 %v650_v41, %v1121_v43  ;;  %v664_v24 = vmul.f32 %v662_v44, %v654_v14  ;;  %v595_v25 = vmul.f32 %v590_v18, %v1153_v2  ;;  %v691_v40 = vmul.f32 %v686_v48, %v681_v8 }
 0x1d1   :  { %v665_v59 = vadd.f32 %v663_v47, %v651_v46  ;;  %v1218_v13 = vpop.f32.mrb[5].mxu1  ;;  %v712_v57 = vrot.slane %v410_v19, %v711_v9  ;;  %v596_v0 = vmul.f32 %v594_v45, %v1156_v5  ;;  %v678_v46 = vmul.f32 %v676_v56, %v668_v15 }
 0x1d2   :  { %v666_v51 = vadd.f32 %v664_v24, %v652_v42  ;;  %v690_v7 = vrot.slane %v412_v27, %v1151_v1  ;;  %v702_v26 = vrot.slane %v412_v27, %v697_v4  ;;  %v617_v47 = vmul.f32 %v1069_v30, %v612_v28 }
 0x1d3   :  { %v679_v52 = vadd.f32 %v677_v61, %v665_v59  ;;  %v703_v23 = vmul.f32 %v698_v60, %v1083_v32  ;;  %v726_v41 = vrot.slane %v410_v19, %v725_v12  ;;  %v716_v44 = vrot.slane %v412_v27, %v711_v9 }
 0x1d4   :  { %v680_v39 = vadd.f32 %v678_v46, %v666_v51  ;;  %v692_v14 = vmul.f32 %v690_v7, %v682_v16  ;;  %v607_v18 = vadd.f32 %v605_v6, %v595_v25  ;;  %v717_v8 = vmul.f32 %v712_v57, %v707_v10 }
 0x1d5   :  { %v693_v43 = vadd.f32 %v691_v40, %v679_v52  ;;  %v1304_v48 = vsub.s32 7, %v1130_v53  ;;  %v752_v15 = vrot.slane %v416_v58, %v1142_v62  ;;  %v704_v4 = vmul.f32 %v702_v26, %v1096_v35 }
 0x1d6   :  { %v694_v56 = vadd.f32 %v692_v14, %v680_v39  ;;  %v730_v59 = vrot.slane %v412_v27, %v725_v12  ;;  %v608_v40 = vadd.f32 %v606_v54, %v596_v0  ;;  %v618_v32 = vmul.f32 %v1079_v31, %v616_v50  ;;  %v1308_v14 = vld [vmem:[#allocation3_spill] sm:$0xff] }
 0x1d7   :  { %v705_v61 = vadd.f32 %v703_v23, %v693_v43  ;;  %v738_v45 = vrot.slane %v410_v19, %v1304_v48  ;;  %v731_v51 = vmul.f32 %v726_v41, %v1169_v11  ;;  %v764_v60 = vrot.slane %v416_v58, %v1145_v63  ;;  %v1306_v43 = vld [vmem:[#allocation4_spill] sm:$0xff] }
 0x1d8   :  { %v490_v28 = vpop.f32.mrb[6].mxu1  ;;  %v706_v10 = vadd.f32 %v704_v4, %v694_v56  ;;  %v718_v16 = vmul.f32 %v716_v44, %v1181_v17  ;;  %v1305_v19 = vmov %v1304_v48  ;;  %v756_v35 = vrot.slane %v1218_v13, %v1142_v62  ;;  %v1309_v44 = vld [vmem:[#allocation6_spill] sm:$0xff] }
 0x1d9   :  { %v719_v52 = vadd.f32 %v717_v8, %v705_v61  ;;  %v492_v9 = vpop.f32.mrb[7].mxu1  ;;  %v742_v42 = vrot.slane %v412_v27, %v1305_v19  ;;  %v743_v0 = vmul.f32 %v738_v45, %v1087_v33  ;;  %v757_v50 = vmul.f32 %v752_v15, %v1187_v20 }
 0x1da   :  { %v776_v6 = vrot.slane %v490_v28, %v1142_v62  ;;  %v720_v11 = vadd.f32 %v718_v16, %v706_v10  ;;  %v732_v58 = vmul.f32 %v730_v59, %v1191_v21  ;;  %v619_v54 = vadd.f32 %v617_v47, %v607_v18 }
 0x1db   :  { %v733_v12 = vadd.f32 %v731_v51, %v719_v52  ;;  %v620_v24 = vadd.f32 %v618_v32, %v608_v40  ;;  %v768_v53 = vrot.slane %v1218_v13, %v1145_v63  ;;  %v629_v17 = vmul.f32 %v1092_v34, %v624_v49  ;;  %v1310_v40 = vld [vmem:[#allocation5_spill] sm:$0xff] }
 0x1dc   :  { %v630_v27 = vmul.f32 %v1105_v37, %v628_v55  ;;  %v734_v57 = vadd.f32 %v732_v58, %v720_v11  ;;  %v744_v33 = vmul.f32 %v742_v42, %v1100_v36  ;;  %v758_v20 = vmul.f32 %v756_v35, %v1195_v22 }
 0x1dd   :  { %v745_v25 = vadd.f32 %v743_v0, %v733_v12  ;;  %v780_v46 = vrot.slane %v492_v9, %v1142_v62  ;;  %v769_v21 = vmul.f32 %v764_v60, %v1109_v38  ;;  %v781_v26 = vmul.f32 %v776_v6, %v1153_v2 }
 0x1de   :  { %v788_v47 = vrot.slane %v490_v28, %v1145_v63  ;;  %v1307_v13 = vrot.slane %v1306_v43, 2  ;;  %v746_v23 = vadd.f32 %v744_v33, %v734_v57  ;;  %v631_v41 = vadd.f32 %v629_v17, %v619_v54 }
 0x1df   :  { %v759_v7 = vadd.f32 %v757_v50, %v745_v25  ;;  %v632_v39 = vadd.f32 %v630_v27, %v620_v24  ;;  %v770_v22 = vmul.f32 %v768_v53, %v1308_v14  ;;  %v800_v18 = vrot.slane %v490_v28, %v1309_v44 }
 0x1e0   :  { %v575_v49 = vadd.f32 %v1307_v13, %v1306_v43  ;;  %v564_v55 = vpop.f32.mrb[8].mxu1  ;;  %v760_v8 = vadd.f32 %v758_v20, %v746_v23  ;;  %v782_v2 = vmul.f32 %v780_v46, %v1156_v5  ;;  %v792_v48 = vrot.slane %v492_v9, %v1145_v63 }
 0x1e1   :  { %v771_v36 = vadd.f32 %v769_v21, %v759_v7  ;;  %v636_v61 = vrot.slane %v564_v55, %v1142_v62  ;;  %v566_v38 = vpop.f32.mrb[9].mxu1  ;;  %v793_v56 = vmul.f32 %v788_v47, %v1064_v29  ;;  %v812_v4 = vrot.slane %v490_v28, %v1151_v1 }
 0x1e2   :  { %v640_v45 = vrot.slane %v566_v38, %v1142_v62  ;;  %v1311_v32 = vrot.slane %v1310_v40, 2  ;;  %v772_v51 = vadd.f32 %v770_v22, %v760_v8  ;;  %v804_v60 = vrot.slane %v492_v9, %v1309_v44 }
 0x1e3   :  { %v783_v15 = vadd.f32 %v781_v26, %v771_v36  ;;  %v641_v59 = vadd.f32 %v636_v61, %v631_v41  ;;  %v576_v16 = vrot.slane %v575_v49, 1  ;;  %v805_v63 = vmul.f32 %v1069_v30, %v800_v18 }
 0x1e4   :  { %v584_v52 = vadd.f32 %v1311_v32, %v1310_v40  ;;  %v642_v10 = vadd.f32 %v640_v45, %v632_v39  ;;  %v784_v19 = vadd.f32 %v782_v2, %v772_v51  ;;  %v794_v62 = vmul.f32 %v792_v48, %v1074_v3 }
 0x1e5   :  { %v795_v5 = vadd.f32 %v793_v56, %v783_v15  ;;  %v816_v29 = vrot.slane %v492_v9, %v1151_v1  ;;  %v817_v28 = vmul.f32 %v1092_v34, %v812_v4  ;;  %v806_v0 = vmul.f32 %v1079_v31, %v804_v60 }
 0x1e6   :  { %v585_v35 = vrot.slane %v584_v52, 1  ;;  %v796_v12 = vadd.f32 %v794_v62, %v784_v19  ;;  %v577_v50 = vadd.f32 %v576_v16, %v575_v49  ;;  %v829_v34 = vstv %s1291_s7 }
 0x1e7   :  { %v807_v42 = vadd.f32 %v805_v63, %v795_v5  ;;  %v818_v58 = vmul.f32 %v1105_v37, %v816_v29  ;;  %v912_v57 = vmov 0.28284273  }
 0x1e8   :  { %v808_v11 = vadd.f32 %v806_v0, %v796_v12  ;;  %v586_v24 = vadd.f32 %v585_v35, %v584_v52 }
 0x1e9   :  { %v819_v6 = vadd.f32 %v817_v28, %v807_v42 }
 0x1ea   :  { %v820_v30 = vadd.f32 %v818_v58, %v808_v11 }
 0x1eb   :  { %v821_v54 = vadd.f32 %v819_v6, %v577_v50 }
 0x1ec   :  { %v822_v53 = vadd.f32 %v820_v30, %v586_v24 }
 0x1ed   :  { %v823_v25 = vadd.f32 1e-08, %v821_v54 }
 0x1ee   :  { %v824_v3 = vadd.f32 1e-08, %v822_v53 }
 0x1ef   :  { %907 = vrsqrt.f32 %v823_v25 }
 0x1f0   :  { %909 = vrsqrt.f32 %v824_v3 }
 0x1f9   :  { %v908_v1 = vpop.eup %907 }
 0x1fa   :  { %v827_v9 = vmul.f32 %v908_v1, %v641_v59  ;;  %v910_v31 = vpop.eup %909 }
 0x1fb   :  { %v828_v27 = vmul.f32 %v910_v31, %v642_v10 }
 0x1fc   :  { %v830_v17 = vadd.f32 %v829_v34, %v827_v9 }
 0x1fd   :  { %v831_v33 = vadd.f32 %v829_v34, %v828_v27 }
 0x1fe   :  { %vm832_vm7 = vcmp.ge.f32.partialorder %v830_v17, 0.0 }
 0x1ff   :  { %v834_v37 = vsel %vm832_vm7, 1.4142135, %v912_v57  ;;  %vm833_vm8 = vcmp.ge.f32.partialorder %v831_v33, 0.0 }
 0x200   :  { %v836_v20 = vmul.f32 %v834_v37, %v830_v17  ;;  %v835_v46 = vsel %vm833_vm8, 1.4142135, %v912_v57 }
 0x201   :  { %v837_v7 = vmul.f32 %v835_v46, %v831_v33 }
 0x202   :  { %838 = vst [vmem:[%s1292_s8] sm:$0xff] %v836_v20 }
 0x203   :  { %839 = vst [vmem:[%s1292_s8 + $0x8] sm:$0xff] %v837_v7 }

</bundles_post_ra>
